<compile_context>
chip_gen: v7x
topology: tpu7x:2x2x1
jax: 0.10.0
libtpu: 0.0.40
codegen_flags: <defaults>
</compile_context>

<pallas_src>
import jax
import jax.numpy as jnp
from jax import lax
from jax.experimental import pallas as pl
from jax.experimental.pallas import tpu as pltpu


def _policy_kernel(x_ref, w1_ref, b1_ref, w2t_ref, b2t_ref, o_ref):
    # In-kernel bf16 cast of x (free under DMA/MXU slack; avoids a wrapper-side
    # HBM pass over x).
    xb = x_ref[...].astype(jnp.bfloat16)

    # ---- Linear 1 + ReLU: (tile, hidden). MXU bf16 in, f32 accumulate. ----
    h = jnp.dot(xb, w1_ref[...], preferred_element_type=jnp.float32)
    h = jnp.maximum(h + b1_ref[...], 0.0)

    # ---- Linear 2, transposed: logits^T = w2^T @ h^T -> (act_dim, tile). ----
    # Expressed as A @ B^T (contract both minor dims, flash-attention style), so
    # the stored output is lane-dense with ZERO padded columns.
    logits = lax.dot_general(
        w2t_ref[...], h.astype(jnp.bfloat16),
        dimension_numbers=(((1,), (1,)), ((), ())),
        preferred_element_type=jnp.float32)
    logits = logits + b2t_ref[...]

    # ---- Numerically stable softmax over the action dim (axis 0 here). ----
    # All reductions are over act/hidden dims only (never over batch), so any
    # garbage rows of a partial edge block stay confined to unwritten columns.
    m = jnp.max(logits, axis=0, keepdims=True)
    e = jnp.exp(logits - m)
    denom = jnp.sum(e, axis=0, keepdims=True)
    # Exact divide (not approx reciprocal) so each row sums to 1 to f32 precision.
    o_ref[...] = (e / denom).astype(o_ref.dtype)


def prepare_params(w1, b1, w2, b2):
    """One-time parameter prep — hoist this out of the rollout hot loop.

    Returns (w1_bf16, b1_f32[1,H], w2^T_bf16[A,H], b2^T_f32[A,1])."""
    w1_b = jnp.asarray(w1, jnp.float32).astype(jnp.bfloat16)          # (obs, hidden)
    b1_r = jnp.asarray(b1, jnp.float32).reshape(1, -1)                 # (1, hidden)
    w2t_b = jnp.asarray(w2, jnp.float32).T.astype(jnp.bfloat16)        # (act, hidden)
    b2t = jnp.asarray(b2, jnp.float32).reshape(-1, 1)                  # (act, 1)
    return w1_b, b1_r, w2t_b, b2t


def _pick_tile(B, tile_b):
    # Batch sits on the lane axis of the output, so the tile must be a multiple
    # of 128 unless a single block covers the whole batch.
    if B <= 128:
        return B
    tile_b = max(128, (int(tile_b) // 128) * 128)
    # Keep >= 2 grid steps when possible so the "parallel" batch axis can shard
    # across both v7x TensorCores.
    two_step = pl.cdiv(pl.cdiv(B, 2), 128) * 128
    return min(tile_b, max(128, two_step))


def policy_network_forward(x, params, *, tile_b=4096):
    """Fused forward pass: softmax(relu(x @ w1 + b1) @ w2 + b2).

    x: (B, obs_dim) f32; params from prepare_params(). Returns (B, act_dim) f32.
    """
    w1_b, b1_r, w2t_b, b2t = params
    B, obs_dim = x.shape
    hidden = w1_b.shape[1]
    act_dim = w2t_b.shape[0]

    tile = _pick_tile(B, tile_b)
    grid = (pl.cdiv(B, tile),)

    cost = pl.CostEstimate(
        flops=2 * B * (obs_dim * hidden + hidden * act_dim),
        transcendentals=B * act_dim,
        bytes_accessed=(x.size * 4 + w1_b.size * 2 + w2t_b.size * 2
                        + b1_r.size * 4 + b2t.size * 4 + B * act_dim * 4),
    )

    out_t = pl.pallas_call(
        _policy_kernel,
        out_shape=jax.ShapeDtypeStruct((act_dim, B), jnp.float32),
        grid=grid,
        in_specs=[
            pl.BlockSpec((tile, obs_dim), lambda i: (i, 0)),     # x: streamed
            pl.BlockSpec((obs_dim, hidden), lambda i: (0, 0)),   # w1: resident
            pl.BlockSpec((1, hidden), lambda i: (0, 0)),         # b1: resident
            pl.BlockSpec((act_dim, hidden), lambda i: (0, 0)),   # w2^T: resident
            pl.BlockSpec((act_dim, 1), lambda i: (0, 0)),        # b2^T: resident
        ],
        out_specs=pl.BlockSpec((act_dim, tile), lambda i: (0, i)),
        compiler_params=pltpu.CompilerParams(
            dimension_semantics=("parallel",),
            vmem_limit_bytes=32 * 1024 * 1024),
        cost_estimate=cost,
    )(x, w1_b, b1_r, w2t_b, b2t)

    # Tiny XLA transpose back to the PyTorch (B, act_dim) orientation.
    return out_t.T


def init_params(key, obs_dim, act_dim, hidden=128):
    """Deterministic init mimicking PyTorch nn.Linear (uniform(-1/sqrt(fan_in)))."""
    k1, k2, k3, k4 = jax.random.split(key, 4)
    bound1 = 1.0 / jnp.sqrt(obs_dim)
    bound2 = 1.0 / jnp.sqrt(hidden)
    w1 = jax.random.uniform(k1, (obs_dim, hidden), jnp.float32, -bound1, bound1)
    b1 = jax.random.uniform(k2, (1, hidden), jnp.float32, -bound1, bound1)
    w2 = jax.random.uniform(k3, (hidden, act_dim), jnp.float32, -bound2, bound2)
    b2 = jax.random.uniform(k4, (1, act_dim), jnp.float32, -bound2, bound2)
    return w1, b1, w2, b2


if __name__ == "__main__":
    key = jax.random.PRNGKey(0)
    obs_dim, act_dim, batch = 32, 8, 300   # B not a tile multiple -> partial edge block

    kx, kp = jax.random.split(key)
    x = jax.random.normal(kx, (batch, obs_dim), jnp.float32)
    w1, b1, w2, b2 = init_params(kp, obs_dim, act_dim)

    params = prepare_params(w1, b1, w2, b2)   # one-time weight prep (hoisted)

    # Small tile so the batch grid has several steps even at this toy size.
    out = policy_network_forward(x, params, tile_b=128)
    out = jax.block_until_ready(out)

    # Reference in pure f32 JAX; kernel uses bf16 MXU inputs -> loose atol.
    h_ref = jnp.maximum(x @ w1 + b1, 0.0)
    ref = jax.nn.softmax(h_ref @ w2 + b2, axis=-1)
    assert out.shape == (batch, act_dim)
    assert jnp.allclose(out, ref, atol=2e-2), "mismatch vs reference"
    assert jnp.allclose(jnp.sum(out, axis=-1), 1.0, atol=1e-3), \
        "softmax rows must sum to 1"

    print("KERNEL_OK")
</pallas_src>

<mosaic_0001>
module attributes {stable_mosaic.version = 11 : i64} {
  func.func @_policy_kernel(%arg0: i32, %arg1: memref<128x32xf32, #tpu.memory_space<vmem>>, %arg2: memref<32x128xbf16, #tpu.memory_space<vmem>>, %arg3: memref<1x128xf32, #tpu.memory_space<vmem>>, %arg4: memref<8x128xbf16, #tpu.memory_space<vmem>>, %arg5: memref<8x1xf32, #tpu.memory_space<vmem>>, %arg6: memref<8x128xf32, #tpu.memory_space<vmem>>) attributes {dimension_semantics = [#tpu.dimension_semantics<parallel>], iteration_bounds = array<i64: 3>, scalar_prefetch = 0 : i64, scratch_operands = 0 : i64, tpu.core_type = #tpu.core_type<tc>, window_params = [{transform_indices = @transform_0, window_bounds = array<i64: 128, 32>}, {pipeline_mode = #tpu.pipeline_mode<synchronous>, transform_indices = @transform_1, window_bounds = array<i64: 32, 128>}, {pipeline_mode = #tpu.pipeline_mode<synchronous>, transform_indices = @transform_2, window_bounds = array<i64: 1, 128>}, {pipeline_mode = #tpu.pipeline_mode<synchronous>, transform_indices = @transform_3, window_bounds = array<i64: 8, 128>}, {pipeline_mode = #tpu.pipeline_mode<synchronous>, transform_indices = @transform_4, window_bounds = array<i64: 8, 1>}, {transform_indices = @transform_5, window_bounds = array<i64: 8, 128>}]} {
    %c0 = arith.constant 0 : index
    %c0_0 = arith.constant 0 : index
    %0 = vector.load %arg1[%c0, %c0_0] : memref<128x32xf32, #tpu.memory_space<vmem>>, vector<128x32xf32>
    %1 = arith.truncf %0 : vector<128x32xf32> to vector<128x32xbf16>
    %c0_1 = arith.constant 0 : index
    %c0_2 = arith.constant 0 : index
    %2 = vector.load %arg2[%c0_1, %c0_2] : memref<32x128xbf16, #tpu.memory_space<vmem>>, vector<32x128xbf16>
    %cst = arith.constant dense<0.000000e+00> : vector<128x128xf32>
    %3 = tpu.matmul %1, %2, %cst {dimension_numbers = #tpu.dot_dimension_numbers<[1], [0], [0], [1], [0, 0, 1, 1], [], []>} : vector<128x32xbf16>, vector<32x128xbf16>, vector<128x128xf32> -> vector<128x128xf32>
    %c0_3 = arith.constant 0 : index
    %c0_4 = arith.constant 0 : index
    %4 = vector.load %arg3[%c0_3, %c0_4] : memref<1x128xf32, #tpu.memory_space<vmem>>, vector<1x128xf32>
    %5 = vector.broadcast %4 : vector<1x128xf32> to vector<128x128xf32>
    %6 = arith.addf %3, %5 : vector<128x128xf32>
    %cst_5 = arith.constant 0.000000e+00 : f32
    %7 = vector.broadcast %cst_5 : f32 to vector<128x128xf32>
    %8 = arith.maximumf %6, %7 : vector<128x128xf32>
    %c0_6 = arith.constant 0 : index
    %c0_7 = arith.constant 0 : index
    %9 = vector.load %arg4[%c0_6, %c0_7] : memref<8x128xbf16, #tpu.memory_space<vmem>>, vector<8x128xbf16>
    %10 = arith.truncf %8 : vector<128x128xf32> to vector<128x128xbf16>
    %cst_8 = arith.constant dense<0.000000e+00> : vector<8x128xf32>
    %11 = tpu.matmul %9, %10, %cst_8 {dimension_numbers = #tpu.dot_dimension_numbers<[1], [1], [0], [0], [0, 0, 1, 0], [], []>} : vector<8x128xbf16>, vector<128x128xbf16>, vector<8x128xf32> -> vector<8x128xf32>
    %c0_9 = arith.constant 0 : index
    %c0_10 = arith.constant 0 : index
    %12 = vector.load %arg5[%c0_9, %c0_10] : memref<8x1xf32, #tpu.memory_space<vmem>>, vector<8x1xf32>
    %13 = vector.broadcast %12 : vector<8x1xf32> to vector<8x128xf32>
    %14 = arith.addf %11, %13 : vector<8x128xf32>
    %cst_11 = arith.constant dense<0xFF800000> : vector<128xf32>
    %15 = vector.multi_reduction <maximumf>, %14, %cst_11 [0] : vector<8x128xf32> to vector<128xf32>
    %16 = vector.shape_cast %15 : vector<128xf32> to vector<1x128xf32>
    %17 = vector.broadcast %16 : vector<1x128xf32> to vector<8x128xf32>
    %18 = arith.subf %14, %17 : vector<8x128xf32>
    %19 = math.exp %18 : vector<8x128xf32>
    %cst_12 = arith.constant dense<0.000000e+00> : vector<128xf32>
    %20 = vector.multi_reduction <add>, %19, %cst_12 [0] : vector<8x128xf32> to vector<128xf32>
    %21 = vector.shape_cast %20 : vector<128xf32> to vector<1x128xf32>
    %22 = vector.broadcast %21 : vector<1x128xf32> to vector<8x128xf32>
    %23 = arith.divf %19, %22 : vector<8x128xf32>
    %c0_13 = arith.constant 0 : index
    %c0_14 = arith.constant 0 : index
    %24 = vector.load %arg6[%c0_13, %c0_14] : memref<8x128xf32, #tpu.memory_space<vmem>>, vector<8x128xf32>
    tpu.vector_store %arg6[%c0_13, %c0_14], %23 {strides = array<i32>} : memref<8x128xf32, #tpu.memory_space<vmem>>, vector<8x128xf32>,
    return
  }
  func.func @transform_0(%arg0: i32) -> (i32, i32) {
    %c0_i32 = arith.constant 0 : i32
    %c0_i32_0 = arith.constant 0 : i32
    return %arg0, %c0_i32 : i32, i32
  }
  func.func @transform_1(%arg0: i32) -> (i32, i32) {
    %c0_i32 = arith.constant 0 : i32
    %c0_i32_0 = arith.constant 0 : i32
    %c0_i32_1 = arith.constant 0 : i32
    return %c0_i32, %c0_i32_0 : i32, i32
  }
  func.func @transform_2(%arg0: i32) -> (i32, i32) {
    %c0_i32 = arith.constant 0 : i32
    %c0_i32_0 = arith.constant 0 : i32
    %c0_i32_1 = arith.constant 0 : i32
    return %c0_i32, %c0_i32_0 : i32, i32
  }
  func.func @transform_3(%arg0: i32) -> (i32, i32) {
    %c0_i32 = arith.constant 0 : i32
    %c0_i32_0 = arith.constant 0 : i32
    %c0_i32_1 = arith.constant 0 : i32
    return %c0_i32, %c0_i32_0 : i32, i32
  }
  func.func @transform_4(%arg0: i32) -> (i32, i32) {
    %c0_i32 = arith.constant 0 : i32
    %c0_i32_0 = arith.constant 0 : i32
    %c0_i32_1 = arith.constant 0 : i32
    return %c0_i32, %c0_i32_0 : i32, i32
  }
  func.func @transform_5(%arg0: i32) -> (i32, i32) {
    %c0_i32 = arith.constant 0 : i32
    %c0_i32_0 = arith.constant 0 : i32
    return %c0_i32, %arg0 : i32, i32
  }
}

</mosaic_0001>

<bundles_post_ra>
// kernel: tpu_custom_call.1
= control target key start
LH: loop header
LB: loop body
LE: loop exit
PB: predicated region body
PF: predicated region fallthrough
CT: control target
= control target key end

     0   :  { %10 = vsyncpa [#allocation3], 0  ;;  %s954_s0 = inlined_call_operand.vmem [shape: f32[300,32], index: 0, kind: input, shape index: {}]   ;;  %s955_s1 = inlined_call_operand.vmem [shape: bf16[32,128], index: 1, kind: input, shape index: {}]   ;;  %s956_s2 = inlined_call_operand.vmem [shape: f32[1,128], index: 2, kind: input, shape index: {}]   ;;  %s957_s3 = inlined_call_operand.vmem [shape: bf16[8,128], index: 3, kind: input, shape index: {}]   ;;  %s958_s4 = inlined_call_operand.vmem [shape: f32[8,1], index: 4, kind: input, shape index: {}]   ;;  %s959_s5 = inlined_call_operand.hbm [shape: f32[8,300], index: 5, kind: output, shape index: {}]  }
   0x1   :  { %12 = vsyncpa [#allocation3 + $0x1], 0  ;;  %s805_s18 = smov 0   ;;  %s807_s19 = smov 0  }
   0x2   :  { %s809_s20 = smov 0   ;;  %s811_s21 = smov 0  }
   0x3 LB: > { %s826_s22 = sadd.s32 4294967295, %s769_s21   ;;  %s577_s23 = sadd.s32 4294967294, %s769_s21   ;;  %s769_s21 = sphi %s811_s21, %s965_s21   ;;  %s765_s20 = sphi %s809_s20, %s964_s20   ;;  %s761_s19 = sphi %s807_s19, %s963_s19   ;;  %s757_s18 = sphi %s805_s18, %s962_s18  }
   0x4   : > { %s830_s24 = sadd.s32 1, %s769_s21   ;;  %s135_s25 = sadd.s32 1, %s765_s20 }
   0x5   : > { %s132_s26 = ssub.s32 %s769_s21, %s830_s24  ;;  %p145_p0 = scmp.ne.s32.totalorder %s765_s20, %s761_s19 }
   0x6   : > { %p133_p1 = scmp.eq.s32.totalorder %s132_s26, 0  ;;  %p146_p2 = scmp.eq.s32.totalorder %s826_s22, 2 }
   0x7   : > { %p151_p3 = scmp.ne.s32.totalorder %s761_s19, %s757_s18  ;;  %p152_p4 = scmp.eq.s32.totalorder %s577_s23, 2 }
   0x8   : > { %s841_s27 = scalar_select %p133_p1, %s765_s20, %s135_s25  }
   0x9   : > { %p843_p5 = por %p146_p2, %p145_p0  ;;  %p847_p6 = por %p152_p4, %p151_p3 }
   0xa   : > { %p580_p7 = scmp.ge.s32.totalorder %s769_s21, 1  ;;  %p199_p8 = scmp.lt.s32.totalorder %s769_s21, 4 }
   0xc   : > { %p200_p9 = pnand %p580_p7, %p199_p8 }
   0xd   : > { %v701_v0 = vld [vmem:[%s955_s1] sm:$0xff] (!%p200_p9)   ;;  %s582_s7 = sshll.u32 (!%p200_p9), %s826_s22, 4  ;;  %v702_v1 = vld [vmem:[%s955_s1 + $0x8] sm:$0xff] (!%p200_p9)   ;;  %vm293_vm0 = vcmask (!%p200_p9), 261120   ;;  %v771_v26 = vmov (!%p200_p9), 0.0   ;;  %vm772_vm1 = vmmov (!%p200_p9), 0  }
   0xe   : > { %203 = sbr.rel (%p200_p9) target bundleno = 592 (0x250), region = 40  ;;  %p236_p10 = scmp.lt.s32.totalorder (!%p200_p9), %s582_s7, 37  ;;  %618 = vmatprep.subr.bf16.mxu0 (!%p200_p9), %v701_v0  ;;  %638 = vmatprep.subr.bf16.mxu1 (!%p200_p9), %v771_v26  ;;  %v440_v27 = vld [vmem:[%s958_s4] sm:$0xff] (!%p200_p9)  ;;  %v773_v28 = vmov (!%p200_p9), 0  }
   0xf   : > { %619 = vmatpush3.bf16.msra.mxu0 (!%p200_p9), %v701_v0  ;;  %654 = vmatprep.mubr.msk.bf16.mxu1 (!%p200_p9), %vm772_vm1, %v771_v26  ;;  %v584_v29 = vld [vmem:[%s956_s2] ss:$0 sm:$0xff] (!%p200_p9)  ;;  %s228_s26 = sand.u32 (!%p200_p9), 1, %s761_s19   ;;  %s596_s6 = sshll.u32 (!%p200_p9), %s826_s22, 7 }
  0x10   : > { %620 = vmatprep.subr.bf16.mxu0 (!%p200_p9), %v702_v1  ;;  %700 = vset.pattern.permute.xlu0 (!%p200_p9), %v773_v28  ;;  %s581_s30 = sshll.u32 (!%p200_p9), %s228_s26, 3  ;;  %s912_s11 = scalar_lea.hbm (!%p200_p9), %s959_s5, %s596_s6 }
  0x11   : > { %443 = vperm.xlu0 (!%p200_p9), %700, %v440_v27   ;;  %s505_s12 = scalar_lea.sflag (!%p200_p9), [#allocation3], %s228_s26  ;;  %s774_s22 = smov (!%p200_p9), [#allocation2]  }
  0x12   : > { %s711_s14 = sshll.u32 (!%p200_p9), %s774_s22, 4  ;;  %s712_s14 = int_to_ptr.vmem [resolvable:$false] %s711_s14 }
  0x13   : > { %621 = vmatpush3.bf16.msra.mxu0 (!%p200_p9), %v702_v1  ;;  %s713_s15 = scalar_lea.vmem (!%p200_p9), %s712_s14, 256 }
  0x15   : > { %s967_s7 = smov (!%p236_p10, %s582_s7), 37 }
  0x16   : > { %s583_s10 = sshll.u32 %s967_s7, 3  ;;  %s230_s7 = scalar_lea.vmem [#allocation2], %s581_s30 }
  0x17   : > { %s863_s13 = scalar_lea.vmem %s954_s0, %s583_s10  ;;  %s518_s8 = sshll.u32 %s230_s7, 4  ;;  %s914_s8 = int_to_ptr.vmem [resolvable:$true] %s518_s8 }
  0x18   : > { %v246_v2 = vld [vmem:[%s863_s13] sm:$0xff]  ;;  %v247_v3 = vld [vmem:[%s863_s13 + $0x8] sm:$0xff]  ;;  %v248_v4 = vld [vmem:[%s863_s13 + $0x10] sm:$0xff]  ;;  %p714_p0 = scmp.lt.s32.totalorder %s914_s8, %s712_s14 }
  0x19   : > { %v262_v5 = vpack.c.bf16 %v247_v3, %v246_v2  ;;  %v249_v6 = vld [vmem:[%s863_s13 + $0x18] sm:$0xff]  ;;  %v250_v7 = vld [vmem:[%s863_s13 + $0x20] sm:$0xff]  ;;  %v251_v8 = vld [vmem:[%s863_s13 + $0x28] sm:$0xff] }
  0x1a   : > { %v263_v9 = vpack.c.bf16 %v249_v6, %v248_v4  ;;  %v264_v10 = vpack.c.bf16 %v251_v8, %v250_v7  ;;  %v252_v11 = vld [vmem:[%s863_s13 + $0x30] sm:$0xff]  ;;  %v253_v12 = vld [vmem:[%s863_s13 + $0x38] sm:$0xff]  ;;  %v254_v13 = vld [vmem:[%s863_s13 + $0x40] sm:$0xff] }
  0x1b   : > { %622 = vmatprep.mubr.msk.bf16.mxu0 %vm293_vm0, %v262_v5  ;;  %v255_v14 = vld [vmem:[%s863_s13 + $0x48] sm:$0xff]  ;;  %v265_v15 = vpack.c.bf16 %v253_v12, %v252_v11  ;;  %v256_v17 = vld [vmem:[%s863_s13 + $0x50] sm:$0xff]  ;;  %v257_v18 = vld [vmem:[%s863_s13 + $0x58] sm:$0xff] }
  0x1c   : > { %623 = vmatmul.mubr.msk.bf16.vlgmr.msra.gmra.mrb[0].mxu0 %vm293_vm0, %v263_v9  ;;  %v266_v16 = vpack.c.bf16 %v255_v14, %v254_v13  ;;  %v258_v19 = vld [vmem:[%s863_s13 + $0x60] sm:$0xff]  ;;  %v259_v20 = vld [vmem:[%s863_s13 + $0x68] sm:$0xff]  ;;  %v267_v21 = vpack.c.bf16 %v257_v18, %v256_v17  ;;  %v260_v23 = vld [vmem:[%s863_s13 + $0x70] sm:$0xff] }
  0x1d   : > { %626 = vmatprep.mubr.msk.bf16.mxu0 %vm293_vm0, %v264_v10  ;;  %v268_v22 = vpack.c.bf16 %v259_v20, %v258_v19  ;;  %v261_v24 = vld [vmem:[%s863_s13 + $0x78] sm:$0xff]  ;;  %s707_s13 = scalar_lea.vmem %s914_s8, 128 }
  0x1e   : > { %v269_v25 = vpack.c.bf16 %v261_v24, %v260_v23  ;;  %p708_p11 = scmp.ne.s32.totalorder %s914_s8, %s707_s13  ;;  %p715_p1 = scmp.lt.s32.totalorder %s713_s15, %s707_s13 }
  0x20   : > { %p709_p12 = pnand %p708_p11, %p843_p5  ;;  %p716_p2 = por %p715_p1, %p714_p0 }
  0x22   : > { %p710_p13 = pneg %p709_p12 }
  0x24   : > { %627 = vmatmul.mubr.msk.bf16.gmra.mrb[4].mxu0 %vm293_vm0, %v265_v15  ;;  %p717_p3 = pnand %p716_p2, %p710_p13 }
  0x25   : > { %630 = vmatprep.mubr.msk.bf16.mxu0 %vm293_vm0, %v266_v16 }
  0x2c   : > { %631 = vmatmul.mubr.msk.bf16.gmra.mrb[8].mxu0 %vm293_vm0, %v267_v21 }
  0x2d   : > { %634 = vmatprep.mubr.msk.bf16.mxu0 %vm293_vm0, %v268_v22  ;;  %v431_v22 = vld [vmem:[%s957_s3] sm:$0xf] }
  0x34   : > { %635 = vmatmul.mubr.msk.bf16.gmra.mrb[12].mxu0 %vm293_vm0, %v269_v25 }
  0x90   : > { %v444_v23 = vpop.permute.xlu0 %443 }
  0xef   : > { %v624_v30 = vpop.f32.mrb[0].mxu0 }
  0xf0   : > { %v361_v31 = vadd.f32 %v624_v30, %v584_v29  ;;  %v352_v32 = vpop.f32.mrb[1].mxu0 }
  0xf1   : > { %v353_v33 = vadd.f32 %v584_v29, %v352_v32  ;;  %v625_v34 = vpop.f32.mrb[2].mxu0 }
  0xf2   : > { %v364_v35 = vadd.f32 %v625_v34, %v584_v29  ;;  %v355_v36 = vpop.f32.mrb[3].mxu0  ;;  %v417_v38 = vmax.f32 %v361_v31, 0.0 }
  0xf3   : > { %v356_v37 = vadd.f32 %v584_v29, %v355_v36  ;;  %v415_v40 = vmax.f32 %v353_v33, 0.0 }
  0xf4   : > { %v418_v39 = vmax.f32 %v364_v35, 0.0 }
  0xf5   : > { %v416_v41 = vmax.f32 %v356_v37, 0.0 }
  0xf6   : > { %v433_v42 = vpack.c.bf16 %v418_v39, %v417_v38 }
  0xf7   : > { %v432_v43 = vpack.c.bf16 %v416_v41, %v415_v40  ;;  %v628_v44 = vpop.f32.mrb[4].mxu0 }
  0xf8   : > { %v377_v45 = vadd.f32 %v628_v44, %v584_v29  ;;  %v368_v46 = vpop.f32.mrb[5].mxu0 }
  0xf9   : > { %639 = vmatpush3.bf16.xpose.msra.mxu1 %v432_v43  ;;  %v369_v47 = vadd.f32 %v584_v29, %v368_v46  ;;  %v629_v48 = vpop.f32.mrb[6].mxu0 }
  0xfa   : > { %v421_v49 = vmax.f32 %v377_v45, 0.0  ;;  %v380_v50 = vadd.f32 %v629_v48, %v584_v29  ;;  %v371_v51 = vpop.f32.mrb[7].mxu0  ;;  %640 = vmatprep.subr.bf16.mxu1 %v771_v26 }
  0xfb   : > { %v419_v52 = vmax.f32 %v369_v47, 0.0  ;;  %v372_v53 = vadd.f32 %v584_v29, %v371_v51 }
  0xfc   : > { %v422_v54 = vmax.f32 %v380_v50, 0.0 }
  0xfd   : > { %v420_v55 = vmax.f32 %v372_v53, 0.0 }
  0xfe   : > { %v435_v56 = vpack.c.bf16 %v422_v54, %v421_v49 }
  0xff   : > { %v434_v57 = vpack.c.bf16 %v420_v55, %v419_v52  ;;  %v632_v58 = vpop.f32.mrb[8].mxu0 }
 0x100   : > { %v393_v59 = vadd.f32 %v632_v58, %v584_v29  ;;  %v384_v60 = vpop.f32.mrb[9].mxu0 }
 0x101   : > { %641 = vmatpush3.bf16.xpose.msra.mxu1 %v433_v42  ;;  %v385_v61 = vadd.f32 %v584_v29, %v384_v60  ;;  %v633_v62 = vpop.f32.mrb[10].mxu0 }
 0x102   : > { %642 = vmatprep.subr.bf16.mxu1 %v771_v26  ;;  %v425_v63 = vmax.f32 %v393_v59, 0.0  ;;  %v396_v0 = vadd.f32 %v633_v62, %v584_v29  ;;  %v387_v1 = vpop.f32.mrb[11].mxu0 }
 0x103   : > { %v423_v2 = vmax.f32 %v385_v61, 0.0  ;;  %v388_v3 = vadd.f32 %v584_v29, %v387_v1 }
 0x104   : > { %v426_v4 = vmax.f32 %v396_v0, 0.0 }
 0x105   : > { %v424_v5 = vmax.f32 %v388_v3, 0.0 }
 0x106   : > { %v437_v6 = vpack.c.bf16 %v426_v4, %v425_v63 }
 0x107   : > { %v436_v7 = vpack.c.bf16 %v424_v5, %v423_v2  ;;  %v636_v8 = vpop.f32.mrb[12].mxu0 }
 0x108   : > { %v409_v9 = vadd.f32 %v636_v8, %v584_v29  ;;  %v400_v10 = vpop.f32.mrb[13].mxu0 }
 0x109   : > { %643 = vmatpush3.bf16.xpose.msra.mxu1 %v434_v57  ;;  %v401_v11 = vadd.f32 %v584_v29, %v400_v10  ;;  %v637_v12 = vpop.f32.mrb[14].mxu0 }
 0x10a   : > { %644 = vmatprep.subr.bf16.mxu1 %v771_v26  ;;  %v429_v13 = vmax.f32 %v409_v9, 0.0  ;;  %v412_v14 = vadd.f32 %v637_v12, %v584_v29  ;;  %v403_v15 = vpop.f32.mrb[15].mxu0 }
 0x10b   : > { %v427_v16 = vmax.f32 %v401_v11, 0.0  ;;  %v404_v17 = vadd.f32 %v584_v29, %v403_v15 }
 0x10c   : > { %v430_v18 = vmax.f32 %v412_v14, 0.0 }
 0x10d   : > { %v428_v19 = vmax.f32 %v404_v17, 0.0 }
 0x10e   : > { %v439_v20 = vpack.c.bf16 %v430_v18, %v429_v13 }
 0x10f   : > { %v438_v21 = vpack.c.bf16 %v428_v19, %v427_v16 }
 0x111   : > { %645 = vmatpush3.bf16.xpose.msra.mxu1 %v435_v56 }
 0x112   : > { %646 = vmatprep.subr.bf16.mxu1 %v771_v26 }
 0x119   : > { %647 = vmatpush3.bf16.xpose.msra.mxu1 %v436_v7 }
 0x11a   : > { %648 = vmatprep.subr.bf16.mxu1 %v771_v26 }
 0x121   : > { %649 = vmatpush3.bf16.xpose.msra.mxu1 %v437_v6 }
 0x122   : > { %650 = vmatprep.subr.bf16.mxu1 %v771_v26 }
 0x129   : > { %651 = vmatpush3.bf16.xpose.msra.mxu1 %v438_v21 }
 0x12a   : > { %652 = vmatprep.subr.bf16.mxu1 %v771_v26 }
 0x131   : > { %653 = vmatpush3.bf16.xpose.msra.mxu1 %v439_v20 }
 0x138   : > { %655 = vmatmul.mubr.bf16.vlgmr.msra.gmra.mrb[0].mxu1 %v431_v22 }
 0x20b   : > { %v480_v24 = vpop.f32.mrb[0].mxu1 }
 0x20c   : > { %v481_v25 = vadd.f32 %v480_v24, %v444_v23  ;;  %v656_v27 = vpop.f32.mrb[1].mxu1 }
 0x20d   : > { %v483_v28 = vpop.f32.mrb[2].mxu1 }
 0x20e   : > { %v486_v29 = vrot.slane %v481_v25, 4  ;;  %v657_v30 = vpop.f32.mrb[3].mxu1 }
 0x210   : > { %v487_v31 = vmax.f32 %v481_v25, %v486_v29 }
 0x212   : > { %v488_v32 = vrot.slane %v487_v31, 2 }
 0x214   : > { %v489_v33 = vmax.f32 %v487_v31, %v488_v32 }
 0x216   : > { %v490_v34 = vrot.slane %v489_v33, 1 }
 0x218   : > { %v491_v26 = vmax.f32 %v489_v33, %v490_v34 }
 0x21a   : > { %v492_v35 = vsub.f32 %v481_v25, %v491_v26 }
 0x21c   : > { %v493_v36 = vmul.f32 1.442695, %v492_v35 }
 0x21e   : > { %703 = vpow2.f32 %v493_v36 }
 0x228   : > { %v704_v37 = vpop.eup %703 }
 0x229   : > { %v495_v38 = vrot.slane %v704_v37, 4 }
 0x22b   : > { %v496_v39 = vadd.f32 %v704_v37, %v495_v38 }
 0x22d   : > { %v497_v40 = vrot.slane %v496_v39, 2 }
 0x22f   : > { %v498_v41 = vadd.f32 %v497_v40, %v496_v39 }
 0x231   : > { %v499_v42 = vrot.slane %v498_v41, 1 }
 0x233   : > { %v500_v43 = vadd.f32 %v499_v42, %v498_v41 }
 0x235   : > { %705 = vrcp.f32 %v500_v43 }
 0x23f   : > { %v706_v44 = vpop.eup %705 }
 0x240   : > { %v502_v45 = vmul.f32 %v706_v44, %v704_v37 }
 0x242   : > { %503 = vst [vmem:[%s230_s7] sm:$0xff] %v502_v45 }
 0x243   : > { %720 = shalt.err (!%p717_p3)
}
 0x244   : > { %s721_s16 = scalar_lea.hbm %s912_s11, 128  ;;  %s725_s25 = scalar_lea.hbm %s959_s5, 384 }
 0x245   : > { %p722_p4 = scmp.ne.s32.totalorder %s912_s11, %s721_s16  ;;  %p726_p9 = scmp.lt.u32.totalorder %s912_s11, %s959_s5 }
 0x246   : > { %p727_p10 = scmp.lt.u32.totalorder %s725_s25, %s721_s16  ;;  %p729_p12 = scmp.lt.u32.totalorder %s721_s16, %s912_s11 }
 0x247   : > { %p723_p7 = pnand %p722_p4, %p843_p5 }
 0x248   : > { %p728_p11 = por %p727_p10, %p726_p9 }
 0x249   : > { %p724_p8 = pneg %p723_p7 }
 0x24a   : > { %p730_p13 = por %p729_p12, %p728_p11 }
 0x24c   : > { %p731_p0 = pnand %p730_p13, %p724_p8 }
 0x24e   : > { %734 = shalt.err (!%p731_p0)
}
 0x24f   : > { %658 = dma.vmem_to_hbm [thread:$0]  (%p843_p5), %s914_s8, 128, %s912_s11, %s505_s12  }
 0x250 PF: > { %p664_p1 = scmp.ge.s32.totalorder %s769_s21, 2  ;;  %s530_s6 = sand.u32 1, %s757_s18  }
 0x251   : > { %s531_s7 = scalar_lea.sflag [#allocation3], %s530_s6 }
 0x252   : > { %p661_p2 = pnand %p664_p1, %p847_p6 }
 0x254   : > { %752 = dma.done.wait (!%p661_p2), %s531_s7, 128  }
 0x255   : > { %754 = vsyncadd (!%p661_p2), %s531_s7, 4294967168  ;;  %p15_p3 = scmp.ge.s32.totalorder %s830_s24, 5   ;;  %s962_s18 = smov %s761_s19 }
 0x256   : > { %s963_s19 = smov %s765_s20  ;;  %s964_s20 = smov %s841_s27 }
 0x257   : > { %s965_s21 = smov %s830_s24  ;;  %17 = sbr.rel (!%p15_p3) target bundleno = 3 (0x3), region = 75 }
 0x25e   :  { %536 = vsyncpa [#allocation3], 1 }
 0x25f   :  { %538 = vsyncpa [#allocation3 + $0x1], 1 }

</bundles_post_ra>
